<compile_context>
chip_gen: v6e
topology: v6e:2x2x1
jax: 0.10.0
libtpu: 0.0.40
codegen_flags: <defaults>
</compile_context>

<pallas_src>
import math
from functools import partial

import jax
import jax.numpy as jnp
from jax.experimental import pallas as pl
from jax.experimental.pallas import tpu as pltpu  # noqa: F401  (TPU backend assumed)

MAX_T = 100            # matches `maxT = 100` in the PyTorch module
T_PAD = 104            # MAX_T rounded up to a multiple of 8 (full sublane groups)
HAND_DIM = 5
OBJ0_DIM = 6
OBJ1_DIM = 9
ROTVEC_DIM = 3
LANE = 128             # lane-dense packed width


# ---------------------------------------------------------------------------
# Pallas kernel: single lane-dense input slab -> N narrow (1, T, C) outputs.
# ---------------------------------------------------------------------------
def _make_unpack_kernel(col_bounds, T):
    """col_bounds: tuple of (lo, hi) static column ranges, one per output."""

    def kernel(packed_ref, *out_refs):
        x = packed_ref[...]                       # (T_PAD, LANE) f32, one vld pass
        for (lo, hi), o_ref in zip(col_bounds, out_refs):
            o_ref[...] = x[None, :T, lo:hi]       # static slice + leading unit dim

    return kernel


def _unpack_pallas(packed, col_bounds, T):
    """One pallas_call: packed (T_PAD, LANE) slab -> tuple of (1, T, C_i) params."""
    T_pad, lanes = packed.shape
    out_shape = tuple(
        jax.ShapeDtypeStruct((1, T, hi - lo), packed.dtype) for lo, hi in col_bounds
    )
    out_specs = tuple(
        pl.BlockSpec((1, T, hi - lo), lambda: (0, 0, 0)) for lo, hi in col_bounds
    )
    return pl.pallas_call(
        _make_unpack_kernel(col_bounds, T),
        out_shape=out_shape,
        grid_spec=pl.GridSpec(
            grid=(),
            in_specs=[pl.BlockSpec((T_pad, lanes), lambda: (0, 0))],  # full-array block
            out_specs=out_specs,
        ),
    )(packed)


# ---------------------------------------------------------------------------
# Whole init path compiled as a single executable (RNG -> offset -> pack -> kernel)
# ---------------------------------------------------------------------------
@partial(jax.jit, static_argnums=(1, 2))
def _build_states(key, num_obj, with_rotvec):
    k_hand, k_obj0, k_obj0r, k_obj1, k_obj1r = jax.random.split(key, 5)

    hand = 0.1 * jax.random.normal(k_hand, (1, MAX_T, HAND_DIM), jnp.float32)
    # +pi/2 on hand channel 3, baked in at construction exactly like PyTorch
    # (applied to the hand init itself, not a global packed column).
    hand = hand.at[0, :, 3].add(jnp.float32(math.pi / 2))

    obj0 = 0.1 * jax.random.normal(k_obj0, (1, MAX_T, OBJ0_DIM), jnp.float32)
    if with_rotvec:
        rot0 = 0.01 * jax.random.normal(k_obj0r, (1, MAX_T, ROTVEC_DIM), jnp.float32)
        obj0 = jnp.concatenate([obj0, rot0], axis=2)

    pieces = [("hand", hand), ("obj0", obj0)]
    if num_obj == 2:
        obj1 = 0.1 * jax.random.normal(k_obj1, (1, MAX_T, OBJ1_DIM), jnp.float32)
        if with_rotvec:
            rot1 = 0.01 * jax.random.normal(k_obj1r, (1, MAX_T, ROTVEC_DIM), jnp.float32)
            obj1 = jnp.concatenate([obj1, rot1], axis=2)
        pieces.append(("obj1", obj1))

    # Pack everything into one lane-dense, sublane-padded (T_PAD, 128) slab.
    names, cols, bounds = [], [], []
    off = 0
    for name, arr in pieces:
        c = arr.shape[2]
        names.append(name)
        bounds.append((off, off + c))
        cols.append(arr[0])                                   # (MAX_T, c)
        off += c
    assert off <= LANE
    packed = jnp.concatenate(cols, axis=1)                    # (MAX_T, C_total)
    packed = jnp.pad(packed, ((0, T_PAD - MAX_T), (0, LANE - off)))

    # Single Pallas launch: unpack slab into the per-parameter outputs.
    outs = _unpack_pallas(packed, tuple(bounds), MAX_T)
    return {name: out for name, out in zip(names, outs)}


# Pure-jnp reference (no packing, no Pallas) using the identical RNG splits.
def _build_states_ref(key, num_obj, with_rotvec):
    k_hand, k_obj0, k_obj0r, k_obj1, k_obj1r = jax.random.split(key, 5)
    hand = 0.1 * jax.random.normal(k_hand, (1, MAX_T, HAND_DIM), jnp.float32)
    hand = hand.at[0, :, 3].add(jnp.float32(math.pi / 2))
    obj0 = 0.1 * jax.random.normal(k_obj0, (1, MAX_T, OBJ0_DIM), jnp.float32)
    if with_rotvec:
        rot0 = 0.01 * jax.random.normal(k_obj0r, (1, MAX_T, ROTVEC_DIM), jnp.float32)
        obj0 = jnp.concatenate([obj0, rot0], axis=2)
    out = {"hand": hand, "obj0": obj0}
    if num_obj == 2:
        obj1 = 0.1 * jax.random.normal(k_obj1, (1, MAX_T, OBJ1_DIM), jnp.float32)
        if with_rotvec:
            rot1 = 0.01 * jax.random.normal(k_obj1r, (1, MAX_T, ROTVEC_DIM), jnp.float32)
            obj1 = jnp.concatenate([obj1, rot1], axis=2)
        out["obj1"] = obj1
    return out


class StatePredictorParamsPallas:
    """JAX/Pallas port of StatePredictorParams.

    Parameters are materialized once in __init__ by a single jitted executable
    containing one fused Pallas unpack kernel.  forward() returns the dict of
    parameter arrays, exactly like the PyTorch ParameterDict:
      {'hand': (1,T,5), 'obj0': (1,T,6)[, 'obj1': (1,T,9)]}
    (+3 rot-vec channels on obj* when with_rotvec=True).
    """

    def __init__(self, num_obj=1, with_rotvec=False, key=None):
        if key is None:
            key = jax.random.PRNGKey(0)
        self.states = _build_states(key, int(num_obj), bool(with_rotvec))

    def forward(self):
        # Pure dict return — offset already applied once at construction,
        # exactly like the PyTorch module. Zero per-forward cost.
        return self.states

    __call__ = forward


if __name__ == "__main__":
    key0 = jax.random.PRNGKey(0)
    model = StatePredictorParamsPallas(num_obj=2, with_rotvec=False, key=key0)
    states = model()                       # forward #1
    states = jax.block_until_ready(states)
    states2 = model()                      # forward #2 — identical, zero-cost

    # shape checks
    assert states["hand"].shape == (1, MAX_T, HAND_DIM)
    assert states["obj0"].shape == (1, MAX_T, OBJ0_DIM)
    assert states["obj1"].shape == (1, MAX_T, OBJ1_DIM)

    # numerical check against the pure-jnp reference (same RNG stream)
    ref = _build_states_ref(key0, 2, False)
    for name in ("hand", "obj0", "obj1"):
        assert jnp.allclose(states[name], ref[name], atol=1e-6), name
    # forward() is idempotent / returns the same stored params
    assert all(jnp.array_equal(states[k], states2[k]) for k in states)

    # also exercise the rotvec branch
    key1 = jax.random.PRNGKey(1)
    model_rv = StatePredictorParamsPallas(num_obj=2, with_rotvec=True, key=key1)
    s_rv = jax.block_until_ready(model_rv())
    assert s_rv["obj0"].shape == (1, MAX_T, OBJ0_DIM + ROTVEC_DIM)
    assert s_rv["obj1"].shape == (1, MAX_T, OBJ1_DIM + ROTVEC_DIM)
    ref_rv = _build_states_ref(key1, 2, True)
    for name in ("hand", "obj0", "obj1"):
        assert jnp.allclose(s_rv[name], ref_rv[name], atol=1e-6), name

    print("KERNEL_OK")
</pallas_src>

<mosaic_0001>
module attributes {stable_mosaic.version = 11 : i64} {
  func.func @kernel(%arg0: memref<104x128xf32, #tpu.memory_space<vmem>>, %arg1: memref<1x100x5xf32, #tpu.memory_space<vmem>>, %arg2: memref<1x100x6xf32, #tpu.memory_space<vmem>>, %arg3: memref<1x100x9xf32, #tpu.memory_space<vmem>>) attributes {dimension_semantics = [], scalar_prefetch = 0 : i64, scratch_operands = 0 : i64, tpu.core_type = #tpu.core_type<tc>} {
    %c0 = arith.constant 0 : index
    %c0_0 = arith.constant 0 : index
    %0 = vector.load %arg0[%c0, %c0_0] : memref<104x128xf32, #tpu.memory_space<vmem>>, vector<104x128xf32>
    %1 = vector.extract_strided_slice %0 {offsets = [0, 0], sizes = [100, 5], strides = [1, 1]} : vector<104x128xf32> to vector<100x5xf32>
    %2 = vector.shape_cast %1 : vector<100x5xf32> to vector<1x100x5xf32>
    %c0_1 = arith.constant 0 : index
    %c0_2 = arith.constant 0 : index
    %c0_3 = arith.constant 0 : index
    %3 = vector.load %arg1[%c0_1, %c0_2, %c0_3] : memref<1x100x5xf32, #tpu.memory_space<vmem>>, vector<1x100x5xf32>
    tpu.vector_store %arg1[%c0_1, %c0_2, %c0_3], %2 {strides = array<i32>} : memref<1x100x5xf32, #tpu.memory_space<vmem>>, vector<1x100x5xf32>,
    %4 = vector.extract_strided_slice %0 {offsets = [0, 5], sizes = [100, 6], strides = [1, 1]} : vector<104x128xf32> to vector<100x6xf32>
    %5 = vector.shape_cast %4 : vector<100x6xf32> to vector<1x100x6xf32>
    %c0_4 = arith.constant 0 : index
    %c0_5 = arith.constant 0 : index
    %c0_6 = arith.constant 0 : index
    %6 = vector.load %arg2[%c0_4, %c0_5, %c0_6] : memref<1x100x6xf32, #tpu.memory_space<vmem>>, vector<1x100x6xf32>
    tpu.vector_store %arg2[%c0_4, %c0_5, %c0_6], %5 {strides = array<i32>} : memref<1x100x6xf32, #tpu.memory_space<vmem>>, vector<1x100x6xf32>,
    %7 = vector.extract_strided_slice %0 {offsets = [0, 11], sizes = [100, 9], strides = [1, 1]} : vector<104x128xf32> to vector<100x9xf32>
    %8 = vector.shape_cast %7 : vector<100x9xf32> to vector<1x100x9xf32>
    %c0_7 = arith.constant 0 : index
    %c0_8 = arith.constant 0 : index
    %c0_9 = arith.constant 0 : index
    %9 = vector.load %arg3[%c0_7, %c0_8, %c0_9] : memref<1x100x9xf32, #tpu.memory_space<vmem>>, vector<1x100x9xf32>
    tpu.vector_store %arg3[%c0_7, %c0_8, %c0_9], %8 {strides = array<i32>} : memref<1x100x9xf32, #tpu.memory_space<vmem>>, vector<1x100x9xf32>,
    return
  }
}

</mosaic_0001>

<bundles_post_ra>
// kernel: _build_states.3
= control target key start
LH: loop header
LB: loop body
LE: loop exit
PB: predicated region body
PF: predicated region fallthrough
CT: control target
= control target key end

     0   :  { %vm24_vm0 = vcmask 39936   ;;  %s174_s18 = smov 123   ;;  %vm37_vm1 = vcmask 35840   ;;  %vm91_vm2 = vcmask 48128   ;;  %vm145_vm3 = vcmask 72704   ;;  %s401_s0 = inlined_call_operand.vmem [shape: f32[104,128], index: 0, kind: input, shape index: {}]   ;;  %s402_s1 = inlined_call_operand.vmem [shape: f32[1,100,5], index: 1, kind: output, shape index: {0}]   ;;  %s403_s2 = inlined_call_operand.vmem [shape: f32[1,100,6], index: 2, kind: output, shape index: {1}]   ;;  %s404_s3 = inlined_call_operand.vmem [shape: f32[1,100,9], index: 3, kind: output, shape index: {2}]  }
   0x1   :  { %v13_v0 = vld [vmem:[%s401_s0 + $0x10] sm:$0xff]  ;;  %v11_v1 = vld [vmem:[%s401_s0] sm:$0xff]  ;;  %v14_v2 = vld [vmem:[%s401_s0 + $0x18] sm:$0xff]  ;;  %vm104_vm4 = vcmask 44032   ;;  %vm158_vm5 = vcmask 68608  }
   0x2   :  { %56 = vrot.lane.b32.xlu1 %v13_v0, %s174_s18  ;;  %27 = vst.msk [vmem:[%s402_s1 + $0x10] sm:$0xff] %vm24_vm0, %v13_v0  ;;  %52 = vrot.lane.b32.xlu0 %v11_v1, %s174_s18  ;;  %25 = vst.msk [vmem:[%s402_s1] sm:$0xff] %vm24_vm0, %v11_v1 }
   0x3   :  { %28 = vst.msk [vmem:[%s402_s1 + $0x18] sm:$0xff] %vm24_vm0, %v14_v2  ;;  %v12_v3 = vld [vmem:[%s401_s0 + $0x8] sm:$0xff]  ;;  %v15_v5 = vld [vmem:[%s401_s0 + $0x20] sm:$0xff]  ;;  %v18_v6 = vld [vmem:[%s401_s0 + $0x38] sm:$0xff] }
   0x4   :  { %v16_v4 = vld [vmem:[%s401_s0 + $0x28] sm:$0xff]  ;;  %26 = vst.msk [vmem:[%s402_s1 + $0x8] sm:$0xff] %vm24_vm0, %v12_v3  ;;  %v17_v7 = vld [vmem:[%s401_s0 + $0x30] sm:$0xff]  ;;  %29 = vst.msk [vmem:[%s402_s1 + $0x20] sm:$0xff] %vm24_vm0, %v15_v5 }
   0x5   :  { %30 = vst.msk [vmem:[%s402_s1 + $0x28] sm:$0xff] %vm24_vm0, %v16_v4  ;;  %32 = vst.msk [vmem:[%s402_s1 + $0x38] sm:$0xff] %vm24_vm0, %v18_v6  ;;  %v20_v8 = vld [vmem:[%s401_s0 + $0x48] sm:$0xff]  ;;  %v19_v9 = vld [vmem:[%s401_s0 + $0x40] sm:$0xff] }
   0x6   :  { %31 = vst.msk [vmem:[%s402_s1 + $0x30] sm:$0xff] %vm24_vm0, %v17_v7  ;;  %v22_v10 = vld [vmem:[%s401_s0 + $0x58] sm:$0xff]  ;;  %34 = vst.msk [vmem:[%s402_s1 + $0x48] sm:$0xff] %vm24_vm0, %v20_v8  ;;  %v21_v11 = vld [vmem:[%s401_s0 + $0x50] sm:$0xff] }
   0x7   :  { %33 = vst.msk [vmem:[%s402_s1 + $0x40] sm:$0xff] %vm24_vm0, %v19_v9  ;;  %36 = vst.msk [vmem:[%s402_s1 + $0x58] sm:$0xff] %vm24_vm0, %v22_v10  ;;  %v23_v12 = vld [vmem:[%s401_s0 + $0x60] sm:$0xff]  ;;  %58 = vrot.lane.b32.xlu1 %v14_v2, %s174_s18  ;;  %s175_s0 = smov 117  }
   0x8   :  { %54 = vrot.lane.b32.xlu0 %v12_v3, %s174_s18  ;;  %35 = vst.msk [vmem:[%s402_s1 + $0x50] sm:$0xff] %vm24_vm0, %v21_v11 }
   0x9   :  { %38 = vst.msk [vmem:[%s402_s1 + $0x60] sm:$0xf] %vm37_vm1, %v23_v12 }
   0xb   :  { %62 = vrot.lane.b32.xlu1 %v16_v4, %s174_s18 }
   0xc   :  { %60 = vrot.lane.b32.xlu0 %v15_v5, %s174_s18 }
   0xf   :  { %66 = vrot.lane.b32.xlu1 %v18_v6, %s174_s18 }
  0x10   :  { %64 = vrot.lane.b32.xlu0 %v17_v7, %s174_s18 }
  0x13   :  { %70 = vrot.lane.b32.xlu1 %v20_v8, %s174_s18 }
  0x14   :  { %68 = vrot.lane.b32.xlu0 %v19_v9, %s174_s18 }
  0x17   :  { %74 = vrot.lane.b32.xlu1 %v22_v10, %s174_s18 }
  0x18   :  { %72 = vrot.lane.b32.xlu0 %v21_v11, %s174_s18 }
  0x1b   :  { %106 = vrot.lane.b32.xlu1 %v11_v1, %s175_s0 }
  0x1c   :  { %76 = vrot.lane.b32.xlu0 %v23_v12, %s174_s18 }
  0x1f   :  { %110 = vrot.lane.b32.xlu1 %v13_v0, %s175_s0 }
  0x20   :  { %108 = vrot.lane.b32.xlu0 %v12_v3, %s175_s0 }
  0x23   :  { %114 = vrot.lane.b32.xlu1 %v15_v5, %s175_s0 }
  0x24   :  { %112 = vrot.lane.b32.xlu0 %v14_v2, %s175_s0 }
  0x27   :  { %118 = vrot.lane.b32.xlu1 %v17_v7, %s175_s0 }
  0x28   :  { %116 = vrot.lane.b32.xlu0 %v16_v4, %s175_s0 }
  0x2b   :  { %122 = vrot.lane.b32.xlu1 %v19_v9, %s175_s0 }
  0x2c   :  { %120 = vrot.lane.b32.xlu0 %v18_v6, %s175_s0 }
  0x2f   :  { %126 = vrot.lane.b32.xlu1 %v21_v11, %s175_s0 }
  0x30   :  { %124 = vrot.lane.b32.xlu0 %v20_v8, %s175_s0 }
  0x33   :  { %130 = vrot.lane.b32.xlu1 %v23_v12, %s175_s0 }
  0x34   :  { %128 = vrot.lane.b32.xlu0 %v22_v10, %s175_s0 }
  0x74   :  { %v57_v13 = vpop.permute.xlu1 %56  ;;  %v53_v14 = vpop.permute.xlu0 %52 }
  0x75   :  { %94 = vst.msk [vmem:[%s403_s2 + $0x10] sm:$0xff] %vm91_vm2, %v57_v13  ;;  %92 = vst.msk [vmem:[%s403_s2] sm:$0xff] %vm91_vm2, %v53_v14 }
  0x79   :  { %v59_v15 = vpop.permute.xlu1 %58 }
  0x7a   :  { %v55_v16 = vpop.permute.xlu0 %54  ;;  %95 = vst.msk [vmem:[%s403_s2 + $0x18] sm:$0xff] %vm91_vm2, %v59_v15 }
  0x7b   :  { %93 = vst.msk [vmem:[%s403_s2 + $0x8] sm:$0xff] %vm91_vm2, %v55_v16 }
  0x7d   :  { %v63_v17 = vpop.permute.xlu1 %62 }
  0x7e   :  { %v61_v18 = vpop.permute.xlu0 %60  ;;  %97 = vst.msk [vmem:[%s403_s2 + $0x28] sm:$0xff] %vm91_vm2, %v63_v17 }
  0x7f   :  { %96 = vst.msk [vmem:[%s403_s2 + $0x20] sm:$0xff] %vm91_vm2, %v61_v18 }
  0x81   :  { %v67_v19 = vpop.permute.xlu1 %66 }
  0x82   :  { %v65_v20 = vpop.permute.xlu0 %64  ;;  %99 = vst.msk [vmem:[%s403_s2 + $0x38] sm:$0xff] %vm91_vm2, %v67_v19 }
  0x83   :  { %98 = vst.msk [vmem:[%s403_s2 + $0x30] sm:$0xff] %vm91_vm2, %v65_v20 }
  0x85   :  { %v71_v21 = vpop.permute.xlu1 %70 }
  0x86   :  { %v69_v22 = vpop.permute.xlu0 %68  ;;  %101 = vst.msk [vmem:[%s403_s2 + $0x48] sm:$0xff] %vm91_vm2, %v71_v21 }
  0x87   :  { %100 = vst.msk [vmem:[%s403_s2 + $0x40] sm:$0xff] %vm91_vm2, %v69_v22 }
  0x89   :  { %v75_v23 = vpop.permute.xlu1 %74 }
  0x8a   :  { %v73_v24 = vpop.permute.xlu0 %72  ;;  %103 = vst.msk [vmem:[%s403_s2 + $0x58] sm:$0xff] %vm91_vm2, %v75_v23 }
  0x8b   :  { %102 = vst.msk [vmem:[%s403_s2 + $0x50] sm:$0xff] %vm91_vm2, %v73_v24 }
  0x8d   :  { %v107_v25 = vpop.permute.xlu1 %106 }
  0x8e   :  { %v77_v26 = vpop.permute.xlu0 %76  ;;  %146 = vst.msk [vmem:[%s404_s3] sm:$0xff] %vm145_vm3, %v107_v25 }
  0x8f   :  { %105 = vst.msk [vmem:[%s403_s2 + $0x60] sm:$0xf] %vm104_vm4, %v77_v26 }
  0x91   :  { %v111_v27 = vpop.permute.xlu1 %110 }
  0x92   :  { %v109_v28 = vpop.permute.xlu0 %108  ;;  %148 = vst.msk [vmem:[%s404_s3 + $0x10] sm:$0xff] %vm145_vm3, %v111_v27 }
  0x93   :  { %147 = vst.msk [vmem:[%s404_s3 + $0x8] sm:$0xff] %vm145_vm3, %v109_v28 }
  0x95   :  { %v115_v29 = vpop.permute.xlu1 %114 }
  0x96   :  { %v113_v30 = vpop.permute.xlu0 %112  ;;  %150 = vst.msk [vmem:[%s404_s3 + $0x20] sm:$0xff] %vm145_vm3, %v115_v29 }
  0x97   :  { %149 = vst.msk [vmem:[%s404_s3 + $0x18] sm:$0xff] %vm145_vm3, %v113_v30 }
  0x99   :  { %v119_v31 = vpop.permute.xlu1 %118 }
  0x9a   :  { %v117_v32 = vpop.permute.xlu0 %116  ;;  %152 = vst.msk [vmem:[%s404_s3 + $0x30] sm:$0xff] %vm145_vm3, %v119_v31 }
  0x9b   :  { %151 = vst.msk [vmem:[%s404_s3 + $0x28] sm:$0xff] %vm145_vm3, %v117_v32 }
  0x9d   :  { %v123_v33 = vpop.permute.xlu1 %122 }
  0x9e   :  { %v121_v34 = vpop.permute.xlu0 %120  ;;  %154 = vst.msk [vmem:[%s404_s3 + $0x40] sm:$0xff] %vm145_vm3, %v123_v33 }
  0x9f   :  { %153 = vst.msk [vmem:[%s404_s3 + $0x38] sm:$0xff] %vm145_vm3, %v121_v34 }
  0xa1   :  { %v127_v35 = vpop.permute.xlu1 %126 }
  0xa2   :  { %v125_v36 = vpop.permute.xlu0 %124  ;;  %156 = vst.msk [vmem:[%s404_s3 + $0x50] sm:$0xff] %vm145_vm3, %v127_v35 }
  0xa3   :  { %155 = vst.msk [vmem:[%s404_s3 + $0x48] sm:$0xff] %vm145_vm3, %v125_v36 }
  0xa5   :  { %v131_v37 = vpop.permute.xlu1 %130 }
  0xa6   :  { %v129_v38 = vpop.permute.xlu0 %128  ;;  %159 = vst.msk [vmem:[%s404_s3 + $0x60] sm:$0xf] %vm158_vm5, %v131_v37 }
  0xa7   :  { %157 = vst.msk [vmem:[%s404_s3 + $0x58] sm:$0xff] %vm145_vm3, %v129_v38 }

</bundles_post_ra>
